<compile_context>
chip_gen: v7x
topology: tpu7x:2x2x1
jax: 0.10.0
libtpu: 0.0.40
codegen_flags: <defaults>
</compile_context>

<pallas_src>
import functools

import jax
import jax.numpy as jnp
from jax import lax
from jax.experimental import pallas as pl
from jax.experimental.pallas import tpu as pltpu


def _make_kernel(num_layers: int, H: int):
    def kernel(*refs):
        # ref layout:
        #   refs[0] : max_len  (1,) int32                 SMEM (scalar prefetch)
        #   refs[1] : lengths  (B, 1) int32               VMEM
        #   refs[2] : xproj0   (T, B, 3H) f32             VMEM (x @ W_i0 + b_i0)
        #   refs[3] : w_h0     (H, 3H)                    VMEM
        #   refs[4] : b_h0     (1, 3H)                    VMEM
        #   refs[5 : 5+4*(L-1)] : per deeper layer (w_i, w_h, b_i, b_h)
        #                         w_i (H, 3H), w_h (H, 3H), b_i (1, 3H), b_h (1, 3H)
        #   refs[-1]: hn       (num_layers, B, H)         output (also the h state)
        max_len_ref = refs[0]
        lengths_ref = refs[1]
        xproj0_ref = refs[2]
        w_h0_ref = refs[3]
        b_h0_ref = refs[4]
        deep_refs = refs[5:5 + 4 * (num_layers - 1)]
        hn_ref = refs[5 + 4 * (num_layers - 1)]

        # h0 = zeros (PyTorch: float_tensor(...).fill_(0.0)).  The output block
        # doubles as the hidden-state accumulator (VMEM-resident for the whole
        # single grid step).
        hn_ref[...] = jnp.zeros_like(hn_ref)

        lengths = lengths_ref[...]  # (B, 1) int32

        # Hoist loop-invariant weight loads out of the recurrence.
        w_h = [w_h0_ref[...]] + [deep_refs[4 * l + 1][...] for l in range(num_layers - 1)]
        b_h = [b_h0_ref[...]] + [deep_refs[4 * l + 3][...] for l in range(num_layers - 1)]
        w_i = [None] + [deep_refs[4 * l][...] for l in range(num_layers - 1)]
        b_i = [None] + [deep_refs[4 * l + 2][...] for l in range(num_layers - 1)]

        def step(t, carry):
            # packed-sequence mask: only sequences with t < length advance.
            mask = (t < lengths).astype(jnp.float32)  # (B, 1)
            layer_in = None
            for l in range(num_layers):
                h_prev = hn_ref[l]  # (B, H)
                if l == 0:
                    # Precomputed x @ W_i0 + b_i0 for this timestep.
                    i_gates = xproj0_ref[t]  # (B, 3H)
                else:
                    i_gates = (
                        jnp.dot(layer_in, w_i[l], preferred_element_type=jnp.float32)
                        + b_i[l]
                    )
                h_gates = (
                    jnp.dot(h_prev, w_h[l], preferred_element_type=jnp.float32)
                    + b_h[l]
                )
                # Gate order along the fused 3H axis: r, z, n (PyTorch order).
                r = jax.nn.sigmoid(i_gates[:, 0:H] + h_gates[:, 0:H])
                z = jax.nn.sigmoid(i_gates[:, H:2 * H] + h_gates[:, H:2 * H])
                n = jnp.tanh(i_gates[:, 2 * H:3 * H] + r * h_gates[:, 2 * H:3 * H])
                h_new = (1.0 - z) * n + z * h_prev
                h_upd = mask * h_new + (1.0 - mask) * h_prev
                hn_ref[l] = h_upd
                layer_in = h_upd
            return carry

        # Only run up to the longest sequence; later steps are pure no-ops.
        lax.fori_loop(0, max_len_ref[0], step, 0)

    return kernel


@functools.partial(jax.jit, static_argnames=("num_layers",))
def pure_gru_classifier(padded, lengths, layer_params, w_out, b_out, *, num_layers):
    """padded: (T, B, I) f32 (time-major, like nn.GRU default); lengths: (B,) int.

    layer_params: tuple of (w_i, w_h, b_i, b_h) per layer with fused gates
      (gate order r, z, n along the 3H axis, already transposed for x @ w):
        w_i: (I_l, 3H), w_h: (H, 3H), b_i: (1, 3H), b_h: (1, 3H)
    w_out: (H, 2), b_out: (1, 2)

    Returns log-softmax predictions; shape (B, 2) for num_layers == 1
    (matches predictions.squeeze(0)), else (num_layers, B, 2).
    """
    T, B, I = padded.shape
    H = w_out.shape[0]

    lengths_i32 = lengths.astype(jnp.int32)
    lengths2d = lengths_i32.reshape(B, 1)
    max_len = jnp.max(lengths_i32).reshape(1)

    w_i0, w_h0, b_i0, b_h0 = layer_params[0]
    # Hoist the layer-0 input projection out of the serial recurrence:
    # one (T*B, I) x (I, 3H) matmul instead of 3*T tiny per-step MXU pushes.
    xproj0 = (padded.reshape(T * B, I) @ w_i0 + b_i0).reshape(T, B, 3 * H)

    cmap2 = lambda i, ml: (0, 0)
    cmap3 = lambda i, ml: (0, 0, 0)

    in_specs = [
        pl.BlockSpec((B, 1), cmap2),           # lengths
        pl.BlockSpec((T, B, 3 * H), cmap3),    # precomputed layer-0 input gates
        pl.BlockSpec((H, 3 * H), cmap2),       # w_h0
        pl.BlockSpec((1, 3 * H), cmap2),       # b_h0
    ]
    args = [lengths2d, xproj0, w_h0, b_h0]
    for (w_i, w_h, b_i, b_h) in layer_params[1:]:
        in_specs += [
            pl.BlockSpec(w_i.shape, cmap2),
            pl.BlockSpec(w_h.shape, cmap2),
            pl.BlockSpec(b_i.shape, cmap2),
            pl.BlockSpec(b_h.shape, cmap2),
        ]
        args += [w_i, w_h, b_i, b_h]

    hn = pl.pallas_call(
        _make_kernel(num_layers, H),
        out_shape=jax.ShapeDtypeStruct((num_layers, B, H), jnp.float32),
        grid_spec=pltpu.PrefetchScalarGridSpec(
            num_scalar_prefetch=1,      # max_len -> SMEM
            grid=(1,),                  # single kernel invocation; time loop inside
            in_specs=in_specs,
            out_specs=pl.BlockSpec((num_layers, B, H), cmap3),
        ),
        compiler_params=pltpu.CompilerParams(
            dimension_semantics=("arbitrary",),
        ),
    )(max_len, *args)

    # Final Linear(H, 2) + LogSoftmax on hn in plain XLA (a last dim of 2 is a
    # poor fit for the kernel's output stores / MXU).
    pre = jnp.einsum("lbh,ho->lbo", hn, w_out) + b_out[None]
    out = jax.nn.log_softmax(pre, axis=-1)
    return out[0] if num_layers == 1 else out


def _ref_forward(padded, lengths, layer_params, w_out, b_out):
    """Pure-JAX reference mirroring PyTorch GRU-over-packed-sequence semantics."""
    T, B, _ = padded.shape
    num_layers = len(layer_params)
    H = w_out.shape[0]
    h = jnp.zeros((num_layers, B, H), jnp.float32)
    for t in range(T):
        mask = (t < lengths).astype(jnp.float32)[:, None]
        layer_in = padded[t]
        new_h = []
        for l, (w_i, w_h, b_i, b_h) in enumerate(layer_params):
            h_prev = h[l]
            ig = layer_in @ w_i + b_i
            hg = h_prev @ w_h + b_h
            r = jax.nn.sigmoid(ig[:, :H] + hg[:, :H])
            z = jax.nn.sigmoid(ig[:, H:2 * H] + hg[:, H:2 * H])
            n = jnp.tanh(ig[:, 2 * H:] + r * hg[:, 2 * H:])
            h_new = (1.0 - z) * n + z * h_prev
            h_upd = mask * h_new + (1.0 - mask) * h_prev
            new_h.append(h_upd)
            layer_in = h_upd
        h = jnp.stack(new_h)
    pre = jnp.einsum("lbh,ho->lbo", h, w_out) + b_out[None]
    out = jax.nn.log_softmax(pre, axis=-1)
    return out[0] if num_layers == 1 else out


if __name__ == "__main__":
    # Small hyperparameters consistent with the module's __init__.
    T = 8            # max sequence length
    B = 8            # batch size
    INPUT_SIZE = 16
    HIDDEN = 32
    NUM_LAYERS = 1   # keeps predictions.squeeze(0) -> (B, 2)

    key = jax.random.PRNGKey(0)
    k_x, k_p = jax.random.split(key)

    # Padded input (seq_len, batch, input_size) and descending lengths
    # (pack_padded_sequence with enforce_sorted=True expects descending).
    padded = jax.random.normal(k_x, (T, B, INPUT_SIZE), dtype=jnp.float32)
    lengths = jnp.array([8, 7, 5, 5, 4, 3, 2, 1], dtype=jnp.int32)

    # Deterministic parameter init, PyTorch-style uniform(-1/sqrt(H), 1/sqrt(H)).
    bound = 1.0 / (HIDDEN ** 0.5)

    def uniform(key, shape):
        return jax.random.uniform(key, shape, jnp.float32, -bound, bound)

    layer_params = []
    for l in range(NUM_LAYERS):
        in_dim = INPUT_SIZE if l == 0 else HIDDEN
        k_p, k1, k2, k3, k4 = jax.random.split(k_p, 5)
        w_i = uniform(k1, (in_dim, 3 * HIDDEN))   # fused gates r|z|n, x @ w_i
        w_h = uniform(k2, (HIDDEN, 3 * HIDDEN))
        b_i = uniform(k3, (1, 3 * HIDDEN))
        b_h = uniform(k4, (1, 3 * HIDDEN))
        layer_params.append((w_i, w_h, b_i, b_h))
    layer_params = tuple(layer_params)

    k_p, k5, k6 = jax.random.split(k_p, 3)
    w_out = uniform(k5, (HIDDEN, 2))   # Linear(hidden, 2), stored transposed
    b_out = uniform(k6, (1, 2))

    out = pure_gru_classifier(
        padded, lengths, layer_params, w_out, b_out, num_layers=NUM_LAYERS
    )
    out = jax.block_until_ready(out)

    ref = _ref_forward(padded, lengths, layer_params, w_out, b_out)
    assert out.shape == (B, 2), out.shape
    assert jnp.allclose(out, ref, rtol=1e-4, atol=1e-5), (out, ref)

    print("KERNEL_OK")
</pallas_src>

<mosaic_0001>
module attributes {stable_mosaic.version = 11 : i64} {
  func.func @kernel(%arg0: i32, %arg1: memref<1xi32, #tpu.memory_space<smem>>, %arg2: memref<8x1xi32, #tpu.memory_space<vmem>>, %arg3: memref<8x8x96xf32, #tpu.memory_space<vmem>>, %arg4: memref<32x96xf32, #tpu.memory_space<vmem>>, %arg5: memref<1x96xf32, #tpu.memory_space<vmem>>, %arg6: memref<1x8x32xf32, #tpu.memory_space<vmem>>) attributes {dimension_semantics = [#tpu.dimension_semantics<arbitrary>], iteration_bounds = array<i64: 1>, scalar_prefetch = 1 : i64, scratch_operands = 0 : i64, tpu.core_type = #tpu.core_type<tc>, window_params = [{pipeline_mode = #tpu.pipeline_mode<synchronous>, transform_indices = @transform_0, window_bounds = array<i64: 8, 1>}, {pipeline_mode = #tpu.pipeline_mode<synchronous>, transform_indices = @transform_1, window_bounds = array<i64: 8, 8, 96>}, {pipeline_mode = #tpu.pipeline_mode<synchronous>, transform_indices = @transform_2, window_bounds = array<i64: 32, 96>}, {pipeline_mode = #tpu.pipeline_mode<synchronous>, transform_indices = @transform_3, window_bounds = array<i64: 1, 96>}, {pipeline_mode = #tpu.pipeline_mode<synchronous>, transform_indices = @transform_4, window_bounds = array<i64: 1, 8, 32>}]} {
    %cst = arith.constant 0.000000e+00 : f32
    %0 = vector.broadcast %cst : f32 to vector<1x8x32xf32>
    %c0 = arith.constant 0 : index
    %c0_0 = arith.constant 0 : index
    %c0_1 = arith.constant 0 : index
    %1 = vector.load %arg6[%c0, %c0_0, %c0_1] : memref<1x8x32xf32, #tpu.memory_space<vmem>>, vector<1x8x32xf32>
    tpu.vector_store %arg6[%c0, %c0_0, %c0_1], %0 {strides = array<i32>} : memref<1x8x32xf32, #tpu.memory_space<vmem>>, vector<1x8x32xf32>,
    %c0_2 = arith.constant 0 : index
    %c0_3 = arith.constant 0 : index
    %2 = vector.load %arg2[%c0_2, %c0_3] : memref<8x1xi32, #tpu.memory_space<vmem>>, vector<8x1xi32>
    %c0_4 = arith.constant 0 : index
    %c0_5 = arith.constant 0 : index
    %3 = vector.load %arg4[%c0_4, %c0_5] : memref<32x96xf32, #tpu.memory_space<vmem>>, vector<32x96xf32>
    %c0_6 = arith.constant 0 : index
    %c0_7 = arith.constant 0 : index
    %4 = vector.load %arg5[%c0_6, %c0_7] : memref<1x96xf32, #tpu.memory_space<vmem>>, vector<1x96xf32>
    %c0_8 = arith.constant 0 : index
    %5 = memref.load %arg1[%c0_8] : memref<1xi32, #tpu.memory_space<smem>>
    %c0_i32 = arith.constant 0 : i32
    %c0_i32_9 = arith.constant 0 : i32
    %6 = arith.subi %5, %c0_i32_9 : i32
    %7 = arith.addi %c0_i32_9, %6 : i32
    %c1_i32 = arith.constant 1 : i32
    scf.for %arg7 = %c0_i32_9 to %7 step %c1_i32  : i32 {
      %8 = vector.broadcast %arg7 : i32 to vector<8x1xi32>
      %9 = arith.cmpi slt, %8, %2 : vector<8x1xi32>
      %10 = arith.extui %9 : vector<8x1xi1> to vector<8x1xi32>
      %11 = arith.sitofp %10 : vector<8x1xi32> to vector<8x1xf32>
      %c0_10 = arith.constant 0 : index
      %c0_11 = arith.constant 0 : index
      %c0_12 = arith.constant 0 : index
      %12 = vector.load %arg6[%c0_10, %c0_11, %c0_12] : memref<1x8x32xf32, #tpu.memory_space<vmem>>, vector<1x8x32xf32>
      %13 = vector.shape_cast %12 : vector<1x8x32xf32> to vector<8x32xf32>
      %14 = arith.index_cast %arg7 : i32 to index
      %c0_13 = arith.constant 0 : index
      %c0_14 = arith.constant 0 : index
      %15 = vector.load %arg3[%14, %c0_13, %c0_14] : memref<8x8x96xf32, #tpu.memory_space<vmem>>, vector<1x8x96xf32>
      %16 = vector.shape_cast %15 : vector<1x8x96xf32> to vector<8x96xf32>
      %cst_15 = arith.constant dense<0.000000e+00> : vector<8x96xf32>
      %17 = tpu.matmul %13, %3, %cst_15 {dimension_numbers = #tpu.dot_dimension_numbers<[1], [0], [0], [1], [0, 0, 1, 1], [], []>} : vector<8x32xf32>, vector<32x96xf32>, vector<8x96xf32> -> vector<8x96xf32>
      %18 = vector.broadcast %4 : vector<1x96xf32> to vector<8x96xf32>
      %19 = arith.addf %17, %18 : vector<8x96xf32>
      %20 = vector.extract_strided_slice %16 {offsets = [0, 0], sizes = [8, 32], strides = [1, 1]} : vector<8x96xf32> to vector<8x32xf32>
      %21 = vector.extract_strided_slice %19 {offsets = [0, 0], sizes = [8, 32], strides = [1, 1]} : vector<8x96xf32> to vector<8x32xf32>
      %22 = arith.addf %20, %21 : vector<8x32xf32>
      %23 = arith.negf %22 : vector<8x32xf32>
      %24 = math.exp %23 : vector<8x32xf32>
      %cst_16 = arith.constant 1.000000e+00 : f32
      %25 = vector.broadcast %cst_16 : f32 to vector<8x32xf32>
      %26 = arith.addf %25, %24 : vector<8x32xf32>
      %27 = arith.divf %25, %26 : vector<8x32xf32>
      %28 = vector.extract_strided_slice %16 {offsets = [0, 32], sizes = [8, 32], strides = [1, 1]} : vector<8x96xf32> to vector<8x32xf32>
      %29 = vector.extract_strided_slice %19 {offsets = [0, 32], sizes = [8, 32], strides = [1, 1]} : vector<8x96xf32> to vector<8x32xf32>
      %30 = arith.addf %28, %29 : vector<8x32xf32>
      %31 = arith.negf %30 : vector<8x32xf32>
      %32 = math.exp %31 : vector<8x32xf32>
      %cst_17 = arith.constant 1.000000e+00 : f32
      %33 = vector.broadcast %cst_17 : f32 to vector<8x32xf32>
      %34 = arith.addf %33, %32 : vector<8x32xf32>
      %35 = arith.divf %33, %34 : vector<8x32xf32>
      %36 = vector.extract_strided_slice %16 {offsets = [0, 64], sizes = [8, 32], strides = [1, 1]} : vector<8x96xf32> to vector<8x32xf32>
      %37 = vector.extract_strided_slice %19 {offsets = [0, 64], sizes = [8, 32], strides = [1, 1]} : vector<8x96xf32> to vector<8x32xf32>
      %38 = arith.mulf %27, %37 : vector<8x32xf32>
      %39 = arith.addf %36, %38 : vector<8x32xf32>
      %40 = math.tanh %39 : vector<8x32xf32>
      %cst_18 = arith.constant 1.000000e+00 : f32
      %41 = vector.broadcast %cst_18 : f32 to vector<8x32xf32>
      %42 = arith.subf %41, %35 : vector<8x32xf32>
      %43 = arith.mulf %42, %40 : vector<8x32xf32>
      %44 = arith.mulf %35, %13 : vector<8x32xf32>
      %45 = arith.addf %43, %44 : vector<8x32xf32>
      %46 = vector.broadcast %11 : vector<8x1xf32> to vector<8x32xf32>
      %47 = arith.mulf %46, %45 : vector<8x32xf32>
      %cst_19 = arith.constant 1.000000e+00 : f32
      %48 = vector.broadcast %cst_19 : f32 to vector<8x1xf32>
      %49 = arith.subf %48, %11 : vector<8x1xf32>
      %50 = vector.broadcast %49 : vector<8x1xf32> to vector<8x32xf32>
      %51 = arith.mulf %50, %13 : vector<8x32xf32>
      %52 = arith.addf %47, %51 : vector<8x32xf32>
      %c0_20 = arith.constant 0 : index
      %c0_21 = arith.constant 0 : index
      %c0_22 = arith.constant 0 : index
      %53 = vector.load %arg6[%c0_20, %c0_21, %c0_22] : memref<1x8x32xf32, #tpu.memory_space<vmem>>, vector<1x8x32xf32>
      %54 = vector.shape_cast %53 : vector<1x8x32xf32> to vector<8x32xf32>
      %55 = vector.shape_cast %52 : vector<8x32xf32> to vector<1x8x32xf32>
      tpu.vector_store %arg6[%c0_20, %c0_21, %c0_22], %55 {strides = array<i32>} : memref<1x8x32xf32, #tpu.memory_space<vmem>>, vector<1x8x32xf32>,
    }
    return
  }
  func.func @transform_0(%arg0: i32, %arg1: memref<1xi32, #tpu.memory_space<smem>>) -> (i32, i32) {
    %c0_i32 = arith.constant 0 : i32
    %c0_i32_0 = arith.constant 0 : i32
    %c0_i32_1 = arith.constant 0 : i32
    return %c0_i32, %c0_i32_0 : i32, i32
  }
  func.func @transform_1(%arg0: i32, %arg1: memref<1xi32, #tpu.memory_space<smem>>) -> (i32, i32, i32) {
    %c0_i32 = arith.constant 0 : i32
    %c0_i32_0 = arith.constant 0 : i32
    %c0_i32_1 = arith.constant 0 : i32
    %c0_i32_2 = arith.constant 0 : i32
    return %c0_i32, %c0_i32_0, %c0_i32_1 : i32, i32, i32
  }
  func.func @transform_2(%arg0: i32, %arg1: memref<1xi32, #tpu.memory_space<smem>>) -> (i32, i32) {
    %c0_i32 = arith.constant 0 : i32
    %c0_i32_0 = arith.constant 0 : i32
    %c0_i32_1 = arith.constant 0 : i32
    return %c0_i32, %c0_i32_0 : i32, i32
  }
  func.func @transform_3(%arg0: i32, %arg1: memref<1xi32, #tpu.memory_space<smem>>) -> (i32, i32) {
    %c0_i32 = arith.constant 0 : i32
    %c0_i32_0 = arith.constant 0 : i32
    %c0_i32_1 = arith.constant 0 : i32
    return %c0_i32, %c0_i32_0 : i32, i32
  }
  func.func @transform_4(%arg0: i32, %arg1: memref<1xi32, #tpu.memory_space<smem>>) -> (i32, i32, i32) {
    %c0_i32 = arith.constant 0 : i32
    %c0_i32_0 = arith.constant 0 : i32
    %c0_i32_1 = arith.constant 0 : i32
    %c0_i32_2 = arith.constant 0 : i32
    return %c0_i32, %c0_i32_0, %c0_i32_1 : i32, i32, i32
  }
}

</mosaic_0001>

<bundles_post_ra>
// kernel: pure_gru_classifier.1
= control target key start
LH: loop header
LB: loop body
LE: loop exit
PB: predicated region body
PF: predicated region fallthrough
CT: control target
= control target key end

     0   :  { %vm19_vm0 = vcmask 261120   ;;  %v244_v0 = vmov 0.0   ;;  %s349_s0 = inlined_call_operand.<no memory space> [shape: s32[1], index: 0, kind: input, shape index: {}]   ;;  %s350_s1 = inlined_call_operand.vmem [shape: s32[8,1], index: 1, kind: input, shape index: {}]   ;;  %s351_s2 = inlined_call_operand.vmem [shape: f32[8,8,96], index: 2, kind: input, shape index: {}]   ;;  %s352_s3 = inlined_call_operand.vmem [shape: f32[32,96], index: 3, kind: input, shape index: {}]   ;;  %s353_s4 = inlined_call_operand.vmem [shape: f32[1,96], index: 4, kind: input, shape index: {}]   ;;  %s354_s5 = inlined_call_operand.vmem [shape: f32[1,8,32], index: 5, kind: output, shape index: {}]  }
   0x1   :  { %20 = vst.msk [vmem:[%s354_s5] sm:$0xff] %vm19_vm0, %v244_v0  ;;  %v289_v1 = vld [vmem:[%s350_s1] sm:$0xff]  ;;  %v299_v3 = vld [vmem:[%s352_s3 + $0x8] sm:$0xff]  ;;  %v304_v4 = vld [vmem:[%s352_s3 + $0x10] sm:$0xff]  ;;  %p184_p0 = scmp.le.s32.totalorder %s349_s0, 0 }
   0x2   :  { %v294_v2 = vld [vmem:[%s352_s3] sm:$0xff]  ;;  %v309_v5 = vld [vmem:[%s352_s3 + $0x18] sm:$0xff]  ;;  %s319_s8 = smov (!%p184_p0), 0  }
   0x3   :  { %v314_v6 = vld [vmem:[%s353_s4] ss:$0 sm:$0xff]  ;;  %181 = sbr.rel (%p184_p0) target bundleno = 717 (0x2cd), region = 38 }
   0xa LB: > { %v207_v7 = vpack.c.bf16 %v299_v3, %v294_v2  ;;  %v245_v8 = vmov 0.0|0.0   ;;  %v210_v9 = vpack.c.bf16 %v309_v5, %v304_v4  ;;  %v34_v10 = vstv %s242_s8  ;;  %v38_v15 = vld [vmem:[%s354_s5] sm:$0xff]  ;;  %s249_s9 = smov 32   ;;  %s250_s10 = smov 64   ;;  %s242_s8 = sphi %s319_s8, %s31_s8  }
   0xb   : > { %206 = vmatprep.subr.bf16.mxu0 %v245_v8  ;;  %vm246_vm1 = vmmov 0   ;;  %v247_v11 = vmov 0.0   ;;  %vm35_vm2 = vcmp.lt.s32.totalorder %v34_v10, %v289_v1  ;;  %v248_v12 = vmov 0   ;;  %s186_s11 = sshll.u32 %s242_s8, 3  ;;  %s251_s15 = smov 96  }
   0xc   : > { %208 = vmatpush3.bf16.msra.mxu0 %v207_v7  ;;  %203 = vmatprep.mubr.msk.f32.mxu0 %vm246_vm1, %v247_v11  ;;  %v185_v13 = vsel %vm35_vm2, 1.0, %v247_v11  ;;  %s40_s14 = scalar_lea.vmem %s351_s2, %s186_s11  ;;  %s31_s8 = sadd.s32 1, %s242_s8  }
   0xd   : > { %209 = vmatprep.subr.bf16.mxu0 %v245_v8  ;;  %228 = vset.pattern.permute.xlu1 %v248_v12  ;;  %v156_v14 = vsub.f32 1.0, %v185_v13  ;;  %v41_v19 = vld [vmem:[%s40_s14] sm:$0xff]  ;;  %p30_p1 = scmp.ge.s32.totalorder %s31_s8, %s349_s0 }
   0xe   : > { %229 = vset.pattern.permute.xlu0 %v248_v12 }
   0xf   : > { %159 = vperm.xlu1 %228, %v156_v14  }
  0x10   : > { %211 = vmatpush3.bf16.msra.mxu0 %v210_v9 }
  0x13   : > { %204 = vmatmul.mubr.msk.f32.vlgmr.msra.gmra.mrb[0].mxu0 %vm19_vm0, %v38_v15  ;;  %152 = vperm.xlu1 %228, %v185_v13  }
  0x17   : > { %145 = vrot.lane.b32.xlu1 %v38_v15, %s249_s9 }
  0x8e   : > { %v160_v30 = vpop.permute.xlu1 %159 }
  0x8f   : > { %v162_v31 = vmul.f32 %v160_v30, %v38_v15 }
  0x92   : > { %v153_v32 = vpop.permute.xlu1 %152 }
  0x96   : > { %v146_v33 = vpop.permute.xlu1 %145 }
  0xe6   : > { %v117_v16 = vpop.f32.mrb[0].mxu0 }
  0xe7   : > { %v118_v17 = vadd.f32 %v314_v6, %v117_v16  ;;  %v205_v18 = vpop.f32.mrb[1].mxu0 }
  0xe9   : > { %129 = vrot.lane.b32.xlu0 %v118_v17, %s250_s10  ;;  %v121_v20 = vadd.f32 %v118_v17, %v41_v19 }
  0xeb   : > { %v189_v21 = vmul.f32 -1.442695, %v121_v20 }
  0xed   : > { %230 = vpow2.f32 %v189_v21 }
  0xf7   : > { %v231_v22 = vpop.eup %230 }
  0xf8   : > { %v125_v23 = vadd.f32 1.0, %v231_v22 }
  0xfa   : > { %232 = vrcp.f32 %v125_v23 }
 0x104   : > { %v233_v24 = vpop.eup %232 }
 0x105   : > { %v139_v34 = vsub.f32 1.0, %v233_v24  ;;  %v148_v36 = vmul.f32 %v233_v24, %v146_v33 }
 0x15b   : > { %v130_v25 = vpop.permute.xlu0 %129 }
 0x15c   : > { %v132_v26 = vmul.f32 %v233_v24, %v130_v25 }
 0x15e   : > { %134 = vrot.lane.b32.xlu0 %v132_v26, %s250_s10 }
 0x1d0   : > { %v135_v27 = vpop.permute.xlu0 %134 }
 0x1d1   : > { %v137_v28 = vadd.f32 %v135_v27, %v41_v19 }
 0x1d3   : > { %234 = vtanh.f32 %v137_v28 }
 0x1dd   : > { %v235_v29 = vpop.eup %234 }
 0x1de   : > { %141 = vrot.lane.b32.xlu0 %v235_v29, %s251_s15 }
 0x1e2   : > { %164 = vrot.lane.b32.xlu0 %v162_v31, %s249_s9 }
 0x250   : > { %v142_v35 = vpop.permute.xlu0 %141 }
 0x251   : > { %v144_v37 = vmul.f32 %v142_v35, %v139_v34 }
 0x253   : > { %v149_v38 = vadd.f32 %v148_v36, %v144_v37 }
 0x254   : > { %v165_v39 = vpop.permute.xlu0 %164 }
 0x255   : > { %v155_v40 = vmul.f32 %v153_v32, %v149_v38 }
 0x257   : > { %v167_v41 = vadd.f32 %v165_v39, %v155_v40 }
 0x259   : > { %169 = vrot.lane.b32.xlu1 %v167_v41, %s251_s15 }
 0x2c6   :  { %33 = sbr.rel (!%p30_p1) target bundleno = 10 (0xa), region = 44 }
 0x2cb   : > { %v170_v42 = vpop.permute.xlu1 %169 }
 0x2cc   : > { %172 = vst.msk [vmem:[%s354_s5] sm:$0xff] %vm19_vm0, %v170_v42 }
 0x2cd PF:  {}

</bundles_post_ra>
